<compile_context>
chip_gen: v6e
topology: v6e:2x2x1
jax: 0.10.0
libtpu: 0.0.40
codegen_flags: <defaults>
</compile_context>

<pallas_src>
import functools

import jax
import jax.numpy as jnp
import numpy as np
from jax import lax
from jax.experimental import pallas as pl
from jax.experimental.pallas import tpu as pltpu

_EPS = 1e-5


def _round_up(v, m):
    return ((v + m - 1) // m) * m


# ---------------------------------------------------------------------------
# kernels
# ---------------------------------------------------------------------------
def _h_tile(x_ref, w1_ref, b1_ref):
    """h = relu(x @ W1 + b1) for the current row tile (bf16 MXU, f32 accum)."""
    h = jnp.dot(x_ref[...], w1_ref[...], preferred_element_type=jnp.float32)
    return jnp.maximum(h + b1_ref[...], 0.0)


def _h_stats_gram_kernel(x_ref, w1_ref, b1_ref, sum_ref, sq_ref, gram_ref):
    """Single stats pass: sum(h), sum(h*h) and the Gram matrix of bf16(h)."""
    @pl.when(pl.program_id(1) == 0)
    def _():
        sum_ref[...] = jnp.zeros_like(sum_ref)
        sq_ref[...] = jnp.zeros_like(sq_ref)
        gram_ref[...] = jnp.zeros_like(gram_ref)

    h = _h_tile(x_ref, w1_ref, b1_ref)
    hb = h.astype(jnp.bfloat16)
    sum_ref[...] += jnp.sum(h, axis=0, keepdims=True)
    sq_ref[...] += jnp.sum(h * h, axis=0, keepdims=True)
    # G += hb^T @ hb  (contraction over the row axis; MXU, f32 accumulation)
    gram_ref[...] += lax.dot_general(hb, hb, (((0,), (0,)), ((), ())),
                                     preferred_element_type=jnp.float32)


def _h_stats_kernel(x_ref, w1_ref, b1_ref, sum_ref, sq_ref):
    """Fallback pass 1: streaming per-feature sum / sum-of-squares of h."""
    @pl.when(pl.program_id(1) == 0)
    def _():
        sum_ref[...] = jnp.zeros_like(sum_ref)
        sq_ref[...] = jnp.zeros_like(sq_ref)

    h = _h_tile(x_ref, w1_ref, b1_ref)
    sum_ref[...] += jnp.sum(h, axis=0, keepdims=True)
    sq_ref[...] += jnp.sum(h * h, axis=0, keepdims=True)


def _g_stats_kernel(x_ref, w1_ref, b1_ref, w2f_ref, bg_ref, sum_ref, sq_ref):
    """Fallback pass 2: streaming moments of g = bn1-folded linear2(h)."""
    @pl.when(pl.program_id(1) == 0)
    def _():
        sum_ref[...] = jnp.zeros_like(sum_ref)
        sq_ref[...] = jnp.zeros_like(sq_ref)

    h = _h_tile(x_ref, w1_ref, b1_ref)
    g = jnp.dot(h.astype(jnp.bfloat16), w2f_ref[...],
                preferred_element_type=jnp.float32) + bg_ref[...]
    sum_ref[...] += jnp.sum(g, axis=0, keepdims=True)
    sq_ref[...] += jnp.sum(g * g, axis=0, keepdims=True)


def _apply_kernel(x_ref, w1_ref, b1_ref, w2f_ref, bg_ref, w3f_ref, by_ref, o_ref):
    """Final pass: y = bn2-folded linear3(bn1-folded linear2(relu(linear1(x))))."""
    h = _h_tile(x_ref, w1_ref, b1_ref)
    g = jnp.dot(h.astype(jnp.bfloat16), w2f_ref[...],
                preferred_element_type=jnp.float32) + bg_ref[...]
    y = jnp.dot(g.astype(jnp.bfloat16), w3f_ref[...],
                preferred_element_type=jnp.float32) + by_ref[...]
    o_ref[...] = y.astype(o_ref.dtype)


# ---------------------------------------------------------------------------
# wrapper helpers
# ---------------------------------------------------------------------------
def _vmem_budget_bytes():
    """~75% of physical VMEM (96 MiB on v5e/v6e, 48 MiB on v7x); safe fallback."""
    cap = 64 << 20
    try:
        cap = int(getattr(pltpu.get_tpu_info(), "vmem_capacity_bytes", cap))
    except Exception:
        pass
    return max((cap * 3) // 4, 32 << 20)


def _pick_row_tile(row_tile, R, D1, D2p, D3p, Dout_p, out_bytes, use_gram, budget):
    """Biggest 16-row-multiple tile whose estimated footprint fits the budget."""
    TR = min(_round_up(max(row_tile, 16), 16), _round_up(max(R, 16), 16))
    # resident weights (conservatively double-buffered by the pipeline)
    weights = 2 * (D1 * D2p * 2 + D2p * 4 + D2p * D3p * 2 + D3p * 4
                   + D3p * Dout_p * 2 + Dout_p * 4)
    gram = 2 * D2p * D2p * 4 if use_gram else 0

    def footprint(tr):
        stream = 2 * tr * D1 * 2 + 2 * tr * Dout_p * out_bytes
        temps = tr * (6 * D2p + 6 * D3p + 4 * Dout_p)
        return weights + gram + stream + temps + (2 << 20)

    while TR > 64 and footprint(TR) > budget:
        TR = _round_up(TR // 2, 16)
    return TR


def prepare_params(params):
    """One-time weight prep: transpose, zero-pad hidden dims to 128 lanes.

    Zero-padded features are exactly inert through the (training-mode) BN
    algebra: their mean is 0, their variance is 0, and every folded weight row
    / column touching them is 0.  W1 is pre-cast to bf16; W2/W3 stay f32
    because the per-call BN folding scales them before casting.
    """
    w1 = jnp.asarray(params["w1"], jnp.float32)   # (D2, D1)
    b1 = jnp.asarray(params["b1"], jnp.float32)   # (D2,)
    w2 = jnp.asarray(params["w2"], jnp.float32)   # (D3, D2)
    w3 = jnp.asarray(params["w3"], jnp.float32)   # (Dout, D1)
    b3 = jnp.asarray(params["b3"], jnp.float32)   # (Dout,)

    D2, D1 = w1.shape
    D3, D2b = w2.shape
    Dout, D3b = w3.shape
    assert D2b == D2
    assert D3b == D3, "OutputLayer requires linear3_in_dim == linear1_in_dim"

    D2p = _round_up(D2, 128)
    D3p = _round_up(D3, 128)
    # Only lane-pad the output features when Dout is already wide; padding a
    # tiny Dout (e.g. 16 -> 128) would inflate the f32 writeback 8x.
    Dout_p = _round_up(Dout, 128) if Dout >= 128 else Dout

    w1t = jnp.pad(w1.T, ((0, 0), (0, D2p - D2)))              # (D1, D2p)
    b1p = jnp.pad(b1, (0, D2p - D2)).reshape(1, -1)           # (1, D2p)
    w2t = jnp.pad(w2.T, ((0, D2p - D2), (0, D3p - D3)))       # (D2p, D3p)
    w3t = jnp.pad(w3.T, ((0, D3p - D3), (0, Dout_p - Dout)))  # (D3p, Dout_p)
    b3p = jnp.pad(b3, (0, Dout_p - Dout)).reshape(1, -1)      # (1, Dout_p)

    return {
        "w1t": w1t.astype(jnp.bfloat16),
        "b1": b1p,
        "w2t": w2t,
        "w3t": w3t,
        "b3": b3p,
    }


# ---------------------------------------------------------------------------
# forward
# ---------------------------------------------------------------------------
def output_layer_forward(x, prepared, out_dim=None, *, row_tile=1024,
                         out_dtype=jnp.float32, use_gram=None):
    """x: (N, T, linear1_in_dim) float32 -> (N, T, out_dim) out_dtype."""
    N, T, D1 = x.shape
    w1t, b1 = prepared["w1t"], prepared["b1"]
    w2t, w3t, b3 = prepared["w2t"], prepared["w3t"], prepared["b3"]
    assert w1t.shape[0] == D1
    D2p = w1t.shape[1]
    D3p = w2t.shape[1]
    Dout_p = w3t.shape[1]
    Dout = Dout_p if out_dim is None else int(out_dim)

    if use_gram is None:
        # Gram adds ~TR*D2p^2 MACs/tile but removes an x re-stream plus a
        # linear1+linear2 recompute (~TR*(D1*D2p + D2p*D3p) MACs/tile).
        use_gram = (D2p <= 2 * (D1 + D3p)) and (D2p * D2p * 4 <= (16 << 20))

    R = N * T
    out_bytes = jnp.dtype(out_dtype).itemsize
    budget = _vmem_budget_bytes()
    TR = _pick_row_tile(row_tile, R, D1, D2p, D3p, Dout_p, out_bytes, use_gram,
                        budget)

    # Row tiling; 'splits' is a leading 'parallel' grid axis so the stats
    # reduction uses both TensorCores on v7x (no-op on single-TC chips).
    n_min = pl.cdiv(R, TR)
    splits = 2 if n_min >= 2 else 1
    n_per_split = pl.cdiv(n_min, splits)
    n_tiles = splits * n_per_split
    R_pad = n_tiles * TR
    n_pad = R_pad - R

    xf = x.reshape(R, D1).astype(jnp.bfloat16)      # bf16 stream halves HBM bytes
    if n_pad:
        xf = jnp.pad(xf, ((0, n_pad), (0, 0)))

    def cparams(semantics):
        return pltpu.CompilerParams(dimension_semantics=semantics,
                                    vmem_limit_bytes=int(budget))

    # --- stats-pass specs: grid = (splits, tiles-per-split) ------------------
    xs_spec = pl.BlockSpec((TR, D1), lambda c, i: (c * n_per_split + i, 0))
    w1s_spec = pl.BlockSpec((D1, D2p), lambda c, i: (0, 0))
    b1s_spec = pl.BlockSpec((1, D2p), lambda c, i: (0, 0))
    w2s_spec = pl.BlockSpec((D2p, D3p), lambda c, i: (0, 0))
    bgs_spec = pl.BlockSpec((1, D3p), lambda c, i: (0, 0))

    def stat_spec(d):   # one (1, d) accumulator slab per split
        return pl.BlockSpec((None, 1, d), lambda c, i: (c, 0, 0))

    def stat_shape(d):
        return jax.ShapeDtypeStruct((splits, 1, d), jnp.float32)

    # --- apply-pass specs: grid = (n_tiles,) ---------------------------------
    xa_spec = pl.BlockSpec((TR, D1), lambda i: (i, 0))
    w1a_spec = pl.BlockSpec((D1, D2p), lambda i: (0, 0))
    b1a_spec = pl.BlockSpec((1, D2p), lambda i: (0, 0))
    w2a_spec = pl.BlockSpec((D2p, D3p), lambda i: (0, 0))
    bga_spec = pl.BlockSpec((1, D3p), lambda i: (0, 0))
    w3a_spec = pl.BlockSpec((D3p, Dout_p), lambda i: (0, 0))
    bya_spec = pl.BlockSpec((1, Dout_p), lambda i: (0, 0))

    x_bytes = R_pad * D1 * 2

    # Padded rows (x = 0) produce exactly h = relu(b1); their contribution is
    # subtracted from the streamed sums host-side (no per-tile masking).
    hp = jnp.maximum(b1, 0.0)                              # (1, D2p)
    hpb = hp.astype(jnp.bfloat16).astype(jnp.float32)

    # ---- pass 1: bn1 moments of h (+ Gram matrix for the bn2 moments) ------
    if use_gram:
        sum1, sq1, gram = pl.pallas_call(
            _h_stats_gram_kernel,
            grid=(splits, n_per_split),
            in_specs=[xs_spec, w1s_spec, b1s_spec],
            out_specs=(stat_spec(D2p), stat_spec(D2p),
                       pl.BlockSpec((None, D2p, D2p), lambda c, i: (c, 0, 0))),
            out_shape=(stat_shape(D2p), stat_shape(D2p),
                       jax.ShapeDtypeStruct((splits, D2p, D2p), jnp.float32)),
            compiler_params=cparams(("parallel", "arbitrary")),
            cost_estimate=pl.CostEstimate(
                flops=2 * R_pad * D2p * (D1 + D2p), transcendentals=0,
                bytes_accessed=x_bytes + 2 * D1 * D2p
                + 4 * splits * D2p * (D2p + 2)),
        )(xf, w1t, b1)
        sum1 = jnp.sum(sum1, axis=0)                       # (1, D2p)
        sq1 = jnp.sum(sq1, axis=0)
        gram = jnp.sum(gram, axis=0)                       # (D2p, D2p)
        gram = gram - n_pad * (hpb.T @ hpb)
    else:
        sum1, sq1 = pl.pallas_call(
            _h_stats_kernel,
            grid=(splits, n_per_split),
            in_specs=[xs_spec, w1s_spec, b1s_spec],
            out_specs=(stat_spec(D2p), stat_spec(D2p)),
            out_shape=(stat_shape(D2p), stat_shape(D2p)),
            compiler_params=cparams(("parallel", "arbitrary")),
            cost_estimate=pl.CostEstimate(
                flops=2 * R_pad * D1 * D2p, transcendentals=0,
                bytes_accessed=x_bytes + 2 * D1 * D2p + 8 * splits * D2p),
        )(xf, w1t, b1)
        sum1 = jnp.sum(sum1, axis=0)
        sq1 = jnp.sum(sq1, axis=0)
        gram = None

    sum1 = sum1 - n_pad * hp
    sq1 = sq1 - n_pad * hp * hp

    mu1 = sum1 / R
    var1 = jnp.maximum(sq1 / R - mu1 * mu1, 0.0)           # biased (training BN)
    s1 = lax.rsqrt(var1 + _EPS)                            # (1, D2p)
    # fold bn1 into linear2:  bn1(h) @ W2 == h @ (s1[:,None]*W2) - (mu1*s1) @ W2
    w2f = (s1.reshape(-1, 1) * w2t).astype(jnp.bfloat16)   # (D2p, D3p)
    bg = -jnp.dot(mu1 * s1, w2t)                           # (1, D3p), f32
    w2f32 = w2f.astype(jnp.float32)                        # exact bf16 values

    # ---- bn2 moments of g = bf16(h) @ W2f + bg ------------------------------
    if use_gram:
        #   sum(g)   = sum(h) @ W2f + R*bg
        #   sum(g^2) = diag(W2f^T G W2f) + 2*bg*(sum(h) @ W2f) + R*bg^2
        sg_lin = jnp.dot(sum1, w2f32)                                   # (1, D3p)
        sum2 = sg_lin + R * bg
        sq2 = (jnp.sum(w2f32 * jnp.dot(gram, w2f32), axis=0, keepdims=True)
               + 2.0 * bg * sg_lin + R * bg * bg)
    else:
        sum2r, sq2r = pl.pallas_call(
            _g_stats_kernel,
            grid=(splits, n_per_split),
            in_specs=[xs_spec, w1s_spec, b1s_spec, w2s_spec, bgs_spec],
            out_specs=(stat_spec(D3p), stat_spec(D3p)),
            out_shape=(stat_shape(D3p), stat_shape(D3p)),
            compiler_params=cparams(("parallel", "arbitrary")),
            cost_estimate=pl.CostEstimate(
                flops=2 * R_pad * (D1 * D2p + D2p * D3p), transcendentals=0,
                bytes_accessed=x_bytes + 2 * (D1 * D2p + D2p * D3p)
                + 8 * splits * D3p),
        )(xf, w1t, b1, w2f, bg)
        g_pad = jnp.dot(hpb, w2f32) + bg                   # constant padded-row g
        sum2 = jnp.sum(sum2r, axis=0) - n_pad * g_pad
        sq2 = jnp.sum(sq2r, axis=0) - n_pad * g_pad * g_pad

    mu2 = sum2 / R
    var2 = jnp.maximum(sq2 / R - mu2 * mu2, 0.0)
    s2 = lax.rsqrt(var2 + _EPS)                            # (1, D3p)
    # fold bn2 into linear3
    w3f = (s2.reshape(-1, 1) * w3t).astype(jnp.bfloat16)   # (D3p, Dout_p)
    by = b3 - jnp.dot(mu2 * s2, w3t)                       # (1, Dout_p)

    # ---- final pass: apply (row tiles independent -> 'parallel'/megacore) ---
    out = pl.pallas_call(
        _apply_kernel,
        grid=(n_tiles,),
        in_specs=[xa_spec, w1a_spec, b1a_spec, w2a_spec, bga_spec, w3a_spec,
                  bya_spec],
        out_specs=pl.BlockSpec((TR, Dout_p), lambda i: (i, 0)),
        out_shape=jax.ShapeDtypeStruct((R_pad, Dout_p), out_dtype),
        compiler_params=cparams(("parallel",)),
        cost_estimate=pl.CostEstimate(
            flops=2 * R_pad * (D1 * D2p + D2p * D3p + D3p * Dout_p),
            transcendentals=0,
            bytes_accessed=x_bytes + out_bytes * R_pad * Dout_p
            + 2 * (D1 * D2p + D2p * D3p + D3p * Dout_p)),
    )(xf, w1t, b1, w2f, bg, w3f, by)

    if R_pad != R or Dout_p != Dout:
        out = out[:R, :Dout]
    return out.reshape(N, T, Dout)


# ---------------------------------------------------------------------------
# init + references
# ---------------------------------------------------------------------------
def init_params(key, linear1_in_dim, linear2_in_dim, linear3_in_dim, out_dim):
    # Mimics PyTorch's default uniform(-1/sqrt(fan_in), +1/sqrt(fan_in)) init.
    k1, k2, k3, k4, k5 = jax.random.split(key, 5)

    def u(k, shape, fan_in):
        bound = 1.0 / np.sqrt(fan_in)
        return jax.random.uniform(k, shape, jnp.float32, -bound, bound)

    return {
        "w1": u(k1, (linear2_in_dim, linear1_in_dim), linear1_in_dim),
        "b1": u(k2, (linear2_in_dim,), linear1_in_dim),
        "w2": u(k3, (linear3_in_dim, linear2_in_dim), linear2_in_dim),
        "w3": u(k4, (out_dim, linear1_in_dim), linear1_in_dim),
        "b3": u(k5, (out_dim,), linear1_in_dim),
    }


def _reference_forward(x, params):
    """Pure-f32 JAX reference reproducing the PyTorch forward (training BN)."""
    h = jnp.einsum("ntd,od->nto", x, params["w1"]) + params["b1"]
    h = jnp.maximum(h, 0.0)
    mu = jnp.mean(h, axis=(0, 1), keepdims=True)
    var = jnp.mean((h - mu) ** 2, axis=(0, 1), keepdims=True)
    h = (h - mu) / jnp.sqrt(var + _EPS)
    g = jnp.einsum("ntd,od->nto", h, params["w2"])
    mu2 = jnp.mean(g, axis=(0, 1), keepdims=True)
    var2 = jnp.mean((g - mu2) ** 2, axis=(0, 1), keepdims=True)
    g = (g - mu2) / jnp.sqrt(var2 + _EPS)
    return jnp.einsum("ntd,od->nto", g, params["w3"]) + params["b3"]


def _bf16_matched_reference(x, params):
    """Mirrors the multipass kernel arithmetic (bf16 matmul inputs, f32 accum,
    BN folded into the following matmul)."""
    N, T, D1 = x.shape
    R = N * T
    w1t = params["w1"].T.astype(jnp.bfloat16)
    b1 = params["b1"].reshape(1, -1).astype(jnp.float32)
    w2t = params["w2"].T.astype(jnp.float32)
    w3t = params["w3"].T.astype(jnp.float32)
    b3 = params["b3"].reshape(1, -1).astype(jnp.float32)

    xf = x.reshape(R, D1).astype(jnp.bfloat16)
    h = jnp.maximum(jnp.dot(xf, w1t, preferred_element_type=jnp.float32) + b1, 0.0)
    mu1 = jnp.sum(h, axis=0, keepdims=True) / R
    var1 = jnp.maximum(jnp.sum(h * h, axis=0, keepdims=True) / R - mu1 * mu1, 0.0)
    s1 = lax.rsqrt(var1 + _EPS)
    w2f = (s1.reshape(-1, 1) * w2t).astype(jnp.bfloat16)
    bg = -jnp.dot(mu1 * s1, w2t)
    g = jnp.dot(h.astype(jnp.bfloat16), w2f, preferred_element_type=jnp.float32) + bg
    mu2 = jnp.sum(g, axis=0, keepdims=True) / R
    var2 = jnp.maximum(jnp.sum(g * g, axis=0, keepdims=True) / R - mu2 * mu2, 0.0)
    s2 = lax.rsqrt(var2 + _EPS)
    w3f = (s2.reshape(-1, 1) * w3t).astype(jnp.bfloat16)
    by = b3 - jnp.dot(mu2 * s2, w3t)
    y = jnp.dot(g.astype(jnp.bfloat16), w3f, preferred_element_type=jnp.float32) + by
    return y.reshape(N, T, -1)


if __name__ == "__main__":
    key = jax.random.PRNGKey(0)

    # --- config 1: Gram (2-pass) path; exercises row padding + split grid ---
    N, T = 2, 17                                     # R = 34 -> padded to 64 rows
    d1, d2, d3, dout = 32, 64, 32, 16                # linear3_in_dim == linear1_in_dim
    kx, kp, key = jax.random.split(key, 3)
    x = jax.random.normal(kx, (N, T, d1), jnp.float32)
    params = init_params(kp, d1, d2, d3, dout)
    prepared = prepare_params(params)

    fwd_gram = jax.jit(functools.partial(output_layer_forward, out_dim=dout,
                                         row_tile=16, use_gram=True))
    fwd_mp = jax.jit(functools.partial(output_layer_forward, out_dim=dout,
                                       row_tile=16, use_gram=False))
    y_gram = jax.block_until_ready(fwd_gram(x, prepared))
    y_mp = jax.block_until_ready(fwd_mp(x, prepared))
    assert y_gram.shape == (N, T, dout) and y_mp.shape == (N, T, dout)

    y_match = jax.block_until_ready(_bf16_matched_reference(x, params))
    y_ref = jax.block_until_ready(_reference_forward(x, params))
    np.testing.assert_allclose(np.asarray(y_mp), np.asarray(y_match),
                               rtol=5e-3, atol=5e-3)
    np.testing.assert_allclose(np.asarray(y_gram), np.asarray(y_mp),
                               rtol=2e-2, atol=2e-2)
    np.testing.assert_allclose(np.asarray(y_gram), np.asarray(y_ref),
                               rtol=1e-1, atol=1e-1)
    np.testing.assert_allclose(np.asarray(y_mp), np.asarray(y_ref),
                               rtol=1e-1, atol=1e-1)

    # --- config 2: wide hidden layer -> auto fallback to the 3-pass path ----
    N2, T2 = 4, 16                                   # 64 rows, 4 tiles, split grid
    e1, e2, e3, eout = 32, 384, 32, 16
    kx2, kp2, key = jax.random.split(key, 3)
    x2 = jax.random.normal(kx2, (N2, T2, e1), jnp.float32)
    params2 = init_params(kp2, e1, e2, e3, eout)
    prepared2 = prepare_params(params2)

    fwd2 = jax.jit(functools.partial(output_layer_forward, out_dim=eout,
                                     row_tile=16))
    y2 = jax.block_until_ready(fwd2(x2, prepared2))
    assert y2.shape == (N2, T2, eout)
    y2_match = jax.block_until_ready(_bf16_matched_reference(x2, params2))
    y2_ref = jax.block_until_ready(_reference_forward(x2, params2))
    np.testing.assert_allclose(np.asarray(y2), np.asarray(y2_match),
                               rtol=5e-3, atol=5e-3)
    np.testing.assert_allclose(np.asarray(y2), np.asarray(y2_ref),
                               rtol=1e-1, atol=1e-1)

    print("KERNEL_OK")
</pallas_src>

<mosaic_0001>
module attributes {stable_mosaic.version = 11 : i64} {
  func.func @_h_stats_gram_kernel(%arg0: i32, %arg1: i32, %arg2: memref<16x32xbf16, #tpu.memory_space<vmem>>, %arg3: memref<32x128xbf16, #tpu.memory_space<vmem>>, %arg4: memref<1x128xf32, #tpu.memory_space<vmem>>, %arg5: memref<1x1x128xf32, #tpu.memory_space<vmem>>, %arg6: memref<1x1x128xf32, #tpu.memory_space<vmem>>, %arg7: memref<1x128x128xf32, #tpu.memory_space<vmem>>) attributes {dimension_semantics = [#tpu.dimension_semantics<parallel>, #tpu.dimension_semantics<arbitrary>], iteration_bounds = array<i64: 2, 2>, scalar_prefetch = 0 : i64, scratch_operands = 0 : i64, tpu.core_type = #tpu.core_type<tc>, window_params = [{transform_indices = @transform_0, window_bounds = array<i64: 16, 32>}, {pipeline_mode = #tpu.pipeline_mode<synchronous>, transform_indices = @transform_1, window_bounds = array<i64: 32, 128>}, {pipeline_mode = #tpu.pipeline_mode<synchronous>, transform_indices = @transform_2, window_bounds = array<i64: 1, 128>}, {transform_indices = @transform_3, window_bounds = array<i64: 1, 1, 128>}, {transform_indices = @transform_4, window_bounds = array<i64: 1, 1, 128>}, {transform_indices = @transform_5, window_bounds = array<i64: 1, 128, 128>}]} {
    %c0_i32 = arith.constant 0 : i32
    %0 = arith.cmpi eq, %arg1, %c0_i32 : i32
    %1 = arith.extui %0 : i1 to i32
    %c0_i32_0 = arith.constant 0 : i32
    %2 = arith.cmpi ne, %1, %c0_i32_0 : i32
    scf.if %2 {
      %cst_28 = arith.constant 0.000000e+00 : f32
      %36 = vector.broadcast %cst_28 : f32 to vector<1x128xf32>
      %c0_29 = arith.constant 0 : index
      %c0_30 = arith.constant 0 : index
      %c0_31 = arith.constant 0 : index
      %37 = vector.load %arg5[%c0_29, %c0_30, %c0_31] : memref<1x1x128xf32, #tpu.memory_space<vmem>>, vector<1x1x128xf32>
      %38 = vector.shape_cast %37 : vector<1x1x128xf32> to vector<1x128xf32>
      %39 = vector.shape_cast %36 : vector<1x128xf32> to vector<1x1x128xf32>
      tpu.vector_store %arg5[%c0_29, %c0_30, %c0_31], %39 {strides = array<i32>} : memref<1x1x128xf32, #tpu.memory_space<vmem>>, vector<1x1x128xf32>,
      %cst_32 = arith.constant 0.000000e+00 : f32
      %40 = vector.broadcast %cst_32 : f32 to vector<1x128xf32>
      %c0_33 = arith.constant 0 : index
      %c0_34 = arith.constant 0 : index
      %c0_35 = arith.constant 0 : index
      %41 = vector.load %arg6[%c0_33, %c0_34, %c0_35] : memref<1x1x128xf32, #tpu.memory_space<vmem>>, vector<1x1x128xf32>
      %42 = vector.shape_cast %41 : vector<1x1x128xf32> to vector<1x128xf32>
      %43 = vector.shape_cast %40 : vector<1x128xf32> to vector<1x1x128xf32>
      tpu.vector_store %arg6[%c0_33, %c0_34, %c0_35], %43 {strides = array<i32>} : memref<1x1x128xf32, #tpu.memory_space<vmem>>, vector<1x1x128xf32>,
      %cst_36 = arith.constant 0.000000e+00 : f32
      %44 = vector.broadcast %cst_36 : f32 to vector<128x128xf32>
      %c0_37 = arith.constant 0 : index
      %c0_38 = arith.constant 0 : index
      %c0_39 = arith.constant 0 : index
      %45 = vector.load %arg7[%c0_37, %c0_38, %c0_39] : memref<1x128x128xf32, #tpu.memory_space<vmem>>, vector<1x128x128xf32>
      %46 = vector.shape_cast %45 : vector<1x128x128xf32> to vector<128x128xf32>
      %47 = vector.shape_cast %44 : vector<128x128xf32> to vector<1x128x128xf32>
      tpu.vector_store %arg7[%c0_37, %c0_38, %c0_39], %47 {strides = array<i32>} : memref<1x128x128xf32, #tpu.memory_space<vmem>>, vector<1x128x128xf32>,
    } else {
    }
    %c0 = arith.constant 0 : index
    %c0_1 = arith.constant 0 : index
    %3 = vector.load %arg2[%c0, %c0_1] : memref<16x32xbf16, #tpu.memory_space<vmem>>, vector<16x32xbf16>
    %c0_2 = arith.constant 0 : index
    %c0_3 = arith.constant 0 : index
    %4 = vector.load %arg3[%c0_2, %c0_3] : memref<32x128xbf16, #tpu.memory_space<vmem>>, vector<32x128xbf16>
    %cst = arith.constant dense<0.000000e+00> : vector<16x128xf32>
    %5 = tpu.matmul %3, %4, %cst {dimension_numbers = #tpu.dot_dimension_numbers<[1], [0], [0], [1], [0, 0, 1, 1], [], []>} : vector<16x32xbf16>, vector<32x128xbf16>, vector<16x128xf32> -> vector<16x128xf32>
    %c0_4 = arith.constant 0 : index
    %c0_5 = arith.constant 0 : index
    %6 = vector.load %arg4[%c0_4, %c0_5] : memref<1x128xf32, #tpu.memory_space<vmem>>, vector<1x128xf32>
    %7 = vector.broadcast %6 : vector<1x128xf32> to vector<16x128xf32>
    %8 = arith.addf %5, %7 : vector<16x128xf32>
    %cst_6 = arith.constant 0.000000e+00 : f32
    %9 = vector.broadcast %cst_6 : f32 to vector<16x128xf32>
    %10 = arith.maximumf %8, %9 : vector<16x128xf32>
    %11 = arith.truncf %10 : vector<16x128xf32> to vector<16x128xbf16>
    %c0_7 = arith.constant 0 : index
    %c0_8 = arith.constant 0 : index
    %c0_9 = arith.constant 0 : index
    %12 = vector.load %arg5[%c0_7, %c0_8, %c0_9] : memref<1x1x128xf32, #tpu.memory_space<vmem>>, vector<1x1x128xf32>
    %13 = vector.shape_cast %12 : vector<1x1x128xf32> to vector<1x128xf32>
    %cst_10 = arith.constant dense<0.000000e+00> : vector<128xf32>
    %14 = vector.multi_reduction <add>, %10, %cst_10 [0] : vector<16x128xf32> to vector<128xf32>
    %15 = vector.shape_cast %14 : vector<128xf32> to vector<1x128xf32>
    %16 = arith.addf %13, %15 : vector<1x128xf32>
    %c0_11 = arith.constant 0 : index
    %c0_12 = arith.constant 0 : index
    %c0_13 = arith.constant 0 : index
    %17 = vector.load %arg5[%c0_11, %c0_12, %c0_13] : memref<1x1x128xf32, #tpu.memory_space<vmem>>, vector<1x1x128xf32>
    %18 = vector.shape_cast %17 : vector<1x1x128xf32> to vector<1x128xf32>
    %19 = vector.shape_cast %16 : vector<1x128xf32> to vector<1x1x128xf32>
    tpu.vector_store %arg5[%c0_11, %c0_12, %c0_13], %19 {strides = array<i32>} : memref<1x1x128xf32, #tpu.memory_space<vmem>>, vector<1x1x128xf32>,
    %c0_14 = arith.constant 0 : index
    %c0_15 = arith.constant 0 : index
    %c0_16 = arith.constant 0 : index
    %20 = vector.load %arg6[%c0_14, %c0_15, %c0_16] : memref<1x1x128xf32, #tpu.memory_space<vmem>>, vector<1x1x128xf32>
    %21 = vector.shape_cast %20 : vector<1x1x128xf32> to vector<1x128xf32>
    %22 = arith.mulf %10, %10 : vector<16x128xf32>
    %cst_17 = arith.constant dense<0.000000e+00> : vector<128xf32>
    %23 = vector.multi_reduction <add>, %22, %cst_17 [0] : vector<16x128xf32> to vector<128xf32>
    %24 = vector.shape_cast %23 : vector<128xf32> to vector<1x128xf32>
    %25 = arith.addf %21, %24 : vector<1x128xf32>
    %c0_18 = arith.constant 0 : index
    %c0_19 = arith.constant 0 : index
    %c0_20 = arith.constant 0 : index
    %26 = vector.load %arg6[%c0_18, %c0_19, %c0_20] : memref<1x1x128xf32, #tpu.memory_space<vmem>>, vector<1x1x128xf32>
    %27 = vector.shape_cast %26 : vector<1x1x128xf32> to vector<1x128xf32>
    %28 = vector.shape_cast %25 : vector<1x128xf32> to vector<1x1x128xf32>
    tpu.vector_store %arg6[%c0_18, %c0_19, %c0_20], %28 {strides = array<i32>} : memref<1x1x128xf32, #tpu.memory_space<vmem>>, vector<1x1x128xf32>,
    %c0_21 = arith.constant 0 : index
    %c0_22 = arith.constant 0 : index
    %c0_23 = arith.constant 0 : index
    %29 = vector.load %arg7[%c0_21, %c0_22, %c0_23] : memref<1x128x128xf32, #tpu.memory_space<vmem>>, vector<1x128x128xf32>
    %30 = vector.shape_cast %29 : vector<1x128x128xf32> to vector<128x128xf32>
    %cst_24 = arith.constant dense<0.000000e+00> : vector<128x128xf32>
    %31 = tpu.matmul %11, %11, %cst_24 {dimension_numbers = #tpu.dot_dimension_numbers<[0], [0], [1], [1], [0, 1, 1, 1], [], []>} : vector<16x128xbf16>, vector<16x128xbf16>, vector<128x128xf32> -> vector<128x128xf32>
    %32 = arith.addf %30, %31 : vector<128x128xf32>
    %c0_25 = arith.constant 0 : index
    %c0_26 = arith.constant 0 : index
    %c0_27 = arith.constant 0 : index
    %33 = vector.load %arg7[%c0_25, %c0_26, %c0_27] : memref<1x128x128xf32, #tpu.memory_space<vmem>>, vector<1x128x128xf32>
    %34 = vector.shape_cast %33 : vector<1x128x128xf32> to vector<128x128xf32>
    %35 = vector.shape_cast %32 : vector<128x128xf32> to vector<1x128x128xf32>
    tpu.vector_store %arg7[%c0_25, %c0_26, %c0_27], %35 {strides = array<i32>} : memref<1x128x128xf32, #tpu.memory_space<vmem>>, vector<1x128x128xf32>,
    return
  }
  func.func @transform_0(%arg0: i32, %arg1: i32) -> (i32, i32) {
    %c2_i32 = arith.constant 2 : i32
    %0 = arith.muli %arg0, %c2_i32 : i32
    %1 = arith.addi %0, %arg1 : i32
    %c0_i32 = arith.constant 0 : i32
    %c0_i32_0 = arith.constant 0 : i32
    return %1, %c0_i32 : i32, i32
  }
  func.func @transform_1(%arg0: i32, %arg1: i32) -> (i32, i32) {
    %c0_i32 = arith.constant 0 : i32
    %c0_i32_0 = arith.constant 0 : i32
    %c0_i32_1 = arith.constant 0 : i32
    return %c0_i32, %c0_i32_0 : i32, i32
  }
  func.func @transform_2(%arg0: i32, %arg1: i32) -> (i32, i32) {
    %c0_i32 = arith.constant 0 : i32
    %c0_i32_0 = arith.constant 0 : i32
    %c0_i32_1 = arith.constant 0 : i32
    return %c0_i32, %c0_i32_0 : i32, i32
  }
  func.func @transform_3(%arg0: i32, %arg1: i32) -> (i32, i32, i32) {
    %c0_i32 = arith.constant 0 : i32
    %c0_i32_0 = arith.constant 0 : i32
    %c0_i32_1 = arith.constant 0 : i32
    return %arg0, %c0_i32, %c0_i32_0 : i32, i32, i32
  }
  func.func @transform_4(%arg0: i32, %arg1: i32) -> (i32, i32, i32) {
    %c0_i32 = arith.constant 0 : i32
    %c0_i32_0 = arith.constant 0 : i32
    %c0_i32_1 = arith.constant 0 : i32
    return %arg0, %c0_i32, %c0_i32_0 : i32, i32, i32
  }
  func.func @transform_5(%arg0: i32, %arg1: i32) -> (i32, i32, i32) {
    %c0_i32 = arith.constant 0 : i32
    %c0_i32_0 = arith.constant 0 : i32
    %c0_i32_1 = arith.constant 0 : i32
    return %arg0, %c0_i32, %c0_i32_0 : i32, i32, i32
  }
}

module attributes {stable_mosaic.version = 11 : i64} {
  func.func @_apply_kernel(%arg0: i32, %arg1: memref<16x32xbf16, #tpu.memory_space<vmem>>, %arg2: memref<32x128xbf16, #tpu.memory_space<vmem>>, %arg3: memref<1x128xf32, #tpu.memory_space<vmem>>, %arg4: memref<128x128xbf16, #tpu.memory_space<vmem>>, %arg5: memref<1x128xf32, #tpu.memory_space<vmem>>, %arg6: memref<128x16xbf16, #tpu.memory_space<vmem>>, %arg7: memref<1x16xf32, #tpu.memory_space<vmem>>, %arg8: memref<16x16xf32, #tpu.memory_space<vmem>>) attributes {dimension_semantics = [#tpu.dimension_semantics<parallel>], iteration_bounds = array<i64: 4>, scalar_prefetch = 0 : i64, scratch_operands = 0 : i64, tpu.core_type = #tpu.core_type<tc>, window_params = [{transform_indices = @transform_0, window_bounds = array<i64: 16, 32>}, {pipeline_mode = #tpu.pipeline_mode<synchronous>, transform_indices = @transform_1, window_bounds = array<i64: 32, 128>}, {pipeline_mode = #tpu.pipeline_mode<synchronous>, transform_indices = @transform_2, window_bounds = array<i64: 1, 128>}, {pipeline_mode = #tpu.pipeline_mode<synchronous>, transform_indices = @transform_3, window_bounds = array<i64: 128, 128>}, {pipeline_mode = #tpu.pipeline_mode<synchronous>, transform_indices = @transform_4, window_bounds = array<i64: 1, 128>}, {pipeline_mode = #tpu.pipeline_mode<synchronous>, transform_indices = @transform_5, window_bounds = array<i64: 128, 16>}, {pipeline_mode = #tpu.pipeline_mode<synchronous>, transform_indices = @transform_6, window_bounds = array<i64: 1, 16>}, {transform_indices = @transform_7, window_bounds = array<i64: 16, 16>}]} {
    %c0 = arith.constant 0 : index
    %c0_0 = arith.constant 0 : index
    %0 = vector.load %arg1[%c0, %c0_0] : memref<16x32xbf16, #tpu.memory_space<vmem>>, vector<16x32xbf16>
    %c0_1 = arith.constant 0 : index
    %c0_2 = arith.constant 0 : index
    %1 = vector.load %arg2[%c0_1, %c0_2] : memref<32x128xbf16, #tpu.memory_space<vmem>>, vector<32x128xbf16>
    %cst = arith.constant dense<0.000000e+00> : vector<16x128xf32>
    %2 = tpu.matmul %0, %1, %cst {dimension_numbers = #tpu.dot_dimension_numbers<[1], [0], [0], [1], [0, 0, 1, 1], [], []>} : vector<16x32xbf16>, vector<32x128xbf16>, vector<16x128xf32> -> vector<16x128xf32>
    %c0_3 = arith.constant 0 : index
    %c0_4 = arith.constant 0 : index
    %3 = vector.load %arg3[%c0_3, %c0_4] : memref<1x128xf32, #tpu.memory_space<vmem>>, vector<1x128xf32>
    %4 = vector.broadcast %3 : vector<1x128xf32> to vector<16x128xf32>
    %5 = arith.addf %2, %4 : vector<16x128xf32>
    %cst_5 = arith.constant 0.000000e+00 : f32
    %6 = vector.broadcast %cst_5 : f32 to vector<16x128xf32>
    %7 = arith.maximumf %5, %6 : vector<16x128xf32>
    %8 = arith.truncf %7 : vector<16x128xf32> to vector<16x128xbf16>
    %c0_6 = arith.constant 0 : index
    %c0_7 = arith.constant 0 : index
    %9 = vector.load %arg4[%c0_6, %c0_7] : memref<128x128xbf16, #tpu.memory_space<vmem>>, vector<128x128xbf16>
    %cst_8 = arith.constant dense<0.000000e+00> : vector<16x128xf32>
    %10 = tpu.matmul %8, %9, %cst_8 {dimension_numbers = #tpu.dot_dimension_numbers<[1], [0], [0], [1], [0, 0, 1, 1], [], []>} : vector<16x128xbf16>, vector<128x128xbf16>, vector<16x128xf32> -> vector<16x128xf32>
    %c0_9 = arith.constant 0 : index
    %c0_10 = arith.constant 0 : index
    %11 = vector.load %arg5[%c0_9, %c0_10] : memref<1x128xf32, #tpu.memory_space<vmem>>, vector<1x128xf32>
    %12 = vector.broadcast %11 : vector<1x128xf32> to vector<16x128xf32>
    %13 = arith.addf %10, %12 : vector<16x128xf32>
    %14 = arith.truncf %13 : vector<16x128xf32> to vector<16x128xbf16>
    %c0_11 = arith.constant 0 : index
    %c0_12 = arith.constant 0 : index
    %15 = vector.load %arg6[%c0_11, %c0_12] : memref<128x16xbf16, #tpu.memory_space<vmem>>, vector<128x16xbf16>
    %cst_13 = arith.constant dense<0.000000e+00> : vector<16x16xf32>
    %16 = tpu.matmul %14, %15, %cst_13 {dimension_numbers = #tpu.dot_dimension_numbers<[1], [0], [0], [1], [0, 0, 1, 1], [], []>} : vector<16x128xbf16>, vector<128x16xbf16>, vector<16x16xf32> -> vector<16x16xf32>
    %c0_14 = arith.constant 0 : index
    %c0_15 = arith.constant 0 : index
    %17 = vector.load %arg7[%c0_14, %c0_15] : memref<1x16xf32, #tpu.memory_space<vmem>>, vector<1x16xf32>
    %18 = vector.broadcast %17 : vector<1x16xf32> to vector<16x16xf32>
    %19 = arith.addf %16, %18 : vector<16x16xf32>
    %c0_16 = arith.constant 0 : index
    %c0_17 = arith.constant 0 : index
    %20 = vector.load %arg8[%c0_16, %c0_17] : memref<16x16xf32, #tpu.memory_space<vmem>>, vector<16x16xf32>
    tpu.vector_store %arg8[%c0_16, %c0_17], %19 {strides = array<i32>} : memref<16x16xf32, #tpu.memory_space<vmem>>, vector<16x16xf32>,
    return
  }
  func.func @transform_0(%arg0: i32) -> (i32, i32) {
    %c0_i32 = arith.constant 0 : i32
    %c0_i32_0 = arith.constant 0 : i32
    return %arg0, %c0_i32 : i32, i32
  }
  func.func @transform_1(%arg0: i32) -> (i32, i32) {
    %c0_i32 = arith.constant 0 : i32
    %c0_i32_0 = arith.constant 0 : i32
    %c0_i32_1 = arith.constant 0 : i32
    return %c0_i32, %c0_i32_0 : i32, i32
  }
  func.func @transform_2(%arg0: i32) -> (i32, i32) {
    %c0_i32 = arith.constant 0 : i32
    %c0_i32_0 = arith.constant 0 : i32
    %c0_i32_1 = arith.constant 0 : i32
    return %c0_i32, %c0_i32_0 : i32, i32
  }
  func.func @transform_3(%arg0: i32) -> (i32, i32) {
    %c0_i32 = arith.constant 0 : i32
    %c0_i32_0 = arith.constant 0 : i32
    %c0_i32_1 = arith.constant 0 : i32
    return %c0_i32, %c0_i32_0 : i32, i32
  }
  func.func @transform_4(%arg0: i32) -> (i32, i32) {
    %c0_i32 = arith.constant 0 : i32
    %c0_i32_0 = arith.constant 0 : i32
    %c0_i32_1 = arith.constant 0 : i32
    return %c0_i32, %c0_i32_0 : i32, i32
  }
  func.func @transform_5(%arg0: i32) -> (i32, i32) {
    %c0_i32 = arith.constant 0 : i32
    %c0_i32_0 = arith.constant 0 : i32
    %c0_i32_1 = arith.constant 0 : i32
    return %c0_i32, %c0_i32_0 : i32, i32
  }
  func.func @transform_6(%arg0: i32) -> (i32, i32) {
    %c0_i32 = arith.constant 0 : i32
    %c0_i32_0 = arith.constant 0 : i32
    %c0_i32_1 = arith.constant 0 : i32
    return %c0_i32, %c0_i32_0 : i32, i32
  }
  func.func @transform_7(%arg0: i32) -> (i32, i32) {
    %c0_i32 = arith.constant 0 : i32
    %c0_i32_0 = arith.constant 0 : i32
    return %arg0, %c0_i32 : i32, i32
  }
}

</mosaic_0001>

<bundles_post_ra>
// kernel: output_layer_forward.2
= control target key start
LH: loop header
LB: loop body
LE: loop exit
PB: predicated region body
PF: predicated region fallthrough
CT: control target
= control target key end

     0   :  { %s884_s18 = smov 0   ;;  %s886_s19 = smov 0   ;;  %s1025_s0 = inlined_call_operand.vmem [shape: bf16[64,32], index: 0, kind: input, shape index: {}]   ;;  %s1026_s1 = inlined_call_operand.vmem [shape: bf16[32,128], index: 1, kind: input, shape index: {}]   ;;  %s1027_s2 = inlined_call_operand.vmem [shape: f32[1,128], index: 2, kind: input, shape index: {}]   ;;  %s1028_s3 = inlined_call_operand.vmem [shape: f32[2,1,128], index: 3, kind: output, shape index: {0}]   ;;  %s1029_s4 = inlined_call_operand.vmem [shape: f32[2,1,128], index: 4, kind: output, shape index: {1}]   ;;  %s1030_s5 = inlined_call_operand.vmem [shape: f32[2,128,128], index: 5, kind: output, shape index: {2}]  }
   0x1   :  { %s888_s20 = smov 0   ;;  %s890_s21 = smov 0  }
   0x2   :  { %s892_s22 = smov 0  }
   0x3 LB: > { %s25_s23 = sadd.s32 1, %s841_s20  ;;  %s28_s24 = sadd.s32 1, %s845_s21  ;;  %s849_s22 = sphi %s892_s22, %s16_s22   ;;  %s845_s21 = sphi %s890_s21, %s1034_s21   ;;  %s841_s20 = sphi %s888_s20, %s1033_s20   ;;  %s837_s19 = sphi %s886_s19, %s1032_s19   ;;  %s833_s18 = sphi %s884_s18, %s1031_s18  }
   0x4   : > { %p26_p0 = scmp.ge.s32.totalorder %s25_s23, 2  ;;  %p701_p1 = scmp.ge.s32.totalorder %s849_s22, 1 }
   0x5   : > { %p213_p2 = scmp.lt.s32.totalorder %s849_s22, 5 }
   0x6   : > { %s1036_s23 = smov (%p26_p0, %s25_s23), 0  ;;  %s1038_s24 = smov (!%p26_p0, %s28_s24), %s845_s21 }
   0x7   : > { %p214_p3 = pnand %p701_p1, %p213_p2  ;;  %p30_p4 = scmp.ge.s32.totalorder %s1038_s24, 2 }
   0x8   : > { %s702_s25 = sshll.u32 (!%p214_p3), %s837_s19, 1  ;;  %p259_p5 = scmp.lt.s32.totalorder (!%p214_p3), %s837_s19, 1 }
   0x9   : > { %s1040_s24 = smov (%p30_p4, %s1038_s24), 0  ;;  %217 = sbr.rel (%p214_p3) target bundleno = 574 (0x23e), region = 32 }
   0xa   : > { %s250_s26 = sadd.s32 (!%p214_p3), %s833_s18, %s702_s25  ;;  %p707_p7 = scmp.ne.s32.totalorder (!%p214_p3), %s833_s18, 0 }
   0xb   : > { %s703_s27 = sshll.u32 (!%p214_p3), %s250_s26, 1 }
   0xc   : > { %p252_p6 = scmp.lt.s32.totalorder (!%p214_p3), %s703_s27, 7 }
   0xe   : > { %s1042_s19 = smov (!%p259_p5, %s837_s19), 1  ;;  %s1044_s27 = smov (!%p252_p6, %s703_s27), 7 }
   0xf   : > { %s920_s30 = scalar_lea.vmem %s1028_s3, %s1042_s19  ;;  %s925_s8 = scalar_lea.vmem %s1029_s4, %s1042_s19 }
  0x10   : > { %s704_s9 = sshll.u32 %s1044_s27, 2  ;;  %s723_s10 = sshll.u32 %s1042_s19, 7 }
  0x11   : > { %s930_s13 = scalar_lea.vmem %s1025_s0, %s704_s9  ;;  %s935_s16 = scalar_lea.vmem %s1030_s5, %s723_s10 }
  0x12   : > { %274 = sbr.rel (%p707_p7) target bundleno = 33 (0x21), region = 36 }
  0x17   : > { %v851_v0 = vmov 0.0  }
  0x18   : > { %275 = vst [vmem:[%s920_s30] sm:$0x1] %v851_v0  ;;  %276 = vst [vmem:[%s925_s8] sm:$0x1] %v851_v0 }
  0x19   : > { %277 = vst [vmem:[%s935_s16] sm:$0xff] %v851_v0  ;;  %278 = vst [vmem:[%s935_s16 + $0x8] sm:$0xff] %v851_v0 }
  0x1a   : > { %279 = vst [vmem:[%s935_s16 + $0x10] sm:$0xff] %v851_v0  ;;  %280 = vst [vmem:[%s935_s16 + $0x18] sm:$0xff] %v851_v0 }
  0x1b   : > { %281 = vst [vmem:[%s935_s16 + $0x20] sm:$0xff] %v851_v0  ;;  %282 = vst [vmem:[%s935_s16 + $0x28] sm:$0xff] %v851_v0 }
  0x1c   : > { %283 = vst [vmem:[%s935_s16 + $0x30] sm:$0xff] %v851_v0  ;;  %284 = vst [vmem:[%s935_s16 + $0x38] sm:$0xff] %v851_v0 }
  0x1d   : > { %285 = vst [vmem:[%s935_s16 + $0x40] sm:$0xff] %v851_v0  ;;  %286 = vst [vmem:[%s935_s16 + $0x48] sm:$0xff] %v851_v0 }
  0x1e   : > { %287 = vst [vmem:[%s935_s16 + $0x50] sm:$0xff] %v851_v0  ;;  %288 = vst [vmem:[%s935_s16 + $0x58] sm:$0xff] %v851_v0 }
  0x1f   : > { %289 = vst [vmem:[%s935_s16 + $0x60] sm:$0xff] %v851_v0  ;;  %290 = vst [vmem:[%s935_s16 + $0x68] sm:$0xff] %v851_v0 }
  0x20   : > { %291 = vst [vmem:[%s935_s16 + $0x70] sm:$0xff] %v851_v0  ;;  %292 = vst [vmem:[%s935_s16 + $0x78] sm:$0xff] %v851_v0 }
  0x21 PF: > { %v808_v1 = vld [vmem:[%s1026_s1 + $0x8] sm:$0xff]   ;;  %v852_v2 = vmov 0.0   ;;  %v809_v3 = vld [vmem:[%s1026_s1] sm:$0xff]   ;;  %vm853_vm0 = vmmov 0   ;;  %vm323_vm1 = vcmask 261120   ;;  %vm425_vm2 = vcmask 130048  }
  0x22   : > { %736 = vmatprep.subr.bf16.mxu0 %v852_v2  ;;  %740 = vmatprep.mubr.msk.bf16.mxu0 %vm853_vm0, %v852_v2  ;;  %v810_v4 = vld [vmem:[%s930_s13] sm:$0xff]   ;;  %v395_v43 = vld [vmem:[%s935_s16 + $0x10] sm:$0xff]  ;;  %v396_v48 = vld [vmem:[%s935_s16 + $0x18] sm:$0xff] }
  0x23   : > { %737 = vmatpush3.bf16.msra.mxu0 %v808_v1  ;;  %v708_v5 = vld [vmem:[%s1027_s2] ss:$0 sm:$0xff]  ;;  %v394_v51 = vld [vmem:[%s935_s16 + $0x8] sm:$0xff]  ;;  %v399_v54 = vld [vmem:[%s935_s16 + $0x30] sm:$0xff] }
  0x24   : > { %738 = vmatprep.subr.bf16.mxu0 %v852_v2  ;;  %v371_v28 = vld [vmem:[%s920_s30] sm:$0x1]  ;;  %v400_v60 = vld [vmem:[%s935_s16 + $0x38] sm:$0xff]  ;;  %v398_v63 = vld [vmem:[%s935_s16 + $0x28] sm:$0xff] }
  0x25   : > { %v381_v31 = vld [vmem:[%s925_s8] sm:$0x1]  ;;  %v403_v2 = vld [vmem:[%s935_s16 + $0x50] sm:$0xff] }
  0x26   : > { %v393_v45 = vld [vmem:[%s935_s16] sm:$0xff] }
  0x27   : > { %739 = vmatpush3.bf16.msra.mxu0 %v809_v3  ;;  %v397_v57 = vld [vmem:[%s935_s16 + $0x20] sm:$0xff] }
  0x2a   : > { %741 = vmatmul.mubr.msk.bf16.vlgmr.msra.gmra.mxu0 %vm323_vm1, %v810_v4 }
  0xea   : > { %v361_v6 = vpop.f32.mrf.mxu0 }
  0xeb   : > { %v362_v7 = vadd.f32 %v708_v5, %v361_v6 }
  0xec   : > { %v742_v8 = vpop.f32.mrf.mxu0 }
  0xed   : > { %v368_v10 = vmax.f32 %v362_v7, 0.0  ;;  %v404_v8 = vld [vmem:[%s935_s16 + $0x58] sm:$0xff] }
  0xee   : > { %v364_v9 = vpop.f32.mrf.mxu0 }
  0xef   : > { %v365_v11 = vadd.f32 %v708_v5, %v364_v9  ;;  %v382_v14 = vmul.f32 %v368_v10, %v368_v10  ;;  %v401_v5 = vld [vmem:[%s935_s16 + $0x40] sm:$0xff] }
  0xf0   : > { %v743_v12 = vpop.f32.mrf.mxu0 }
  0xf1   : > { %v369_v13 = vmax.f32 %v365_v11, 0.0  ;;  %v402_v11 = vld [vmem:[%s935_s16 + $0x48] sm:$0xff] }
  0xf3   : > { %v370_v15 = vpack.c.bf16 %v369_v13, %v368_v10  ;;  %v372_v16 = vadd.f32 %v369_v13, %v368_v10  ;;  %v383_v17 = vmul.f32 %v369_v13, %v369_v13 }
  0xf5   : > { %v373_v18 = vrot.slane %v372_v16, 4  ;;  %v384_v19 = vadd.f32 %v383_v17, %v382_v14  ;;  %409 = vxpose.xlu0.c.b16.start.end [1/1] (short) %v370_v15, 128  ;;  %744 = vmatprep.subr.bf16.mxu0 %v370_v15  ;;  %v407_v14 = vld [vmem:[%s935_s16 + $0x70] sm:$0xff]  ;;  %v405_v17 = vld [vmem:[%s935_s16 + $0x60] sm:$0xff] }
  0xf6   : > { %762 = vmatprep.subr.bf16.mxu1 %v370_v15  ;;  %745 = vmatpush3.bf16.msra.mxu0 %v370_v15 }
  0xf7   : > { %v374_v20 = vadd.f32 %v373_v18, %v372_v16  ;;  %v385_v21 = vrot.slane %v384_v19, 4  ;;  %763 = vmatpush3.bf16.msra.mxu1 %v370_v15 }
  0xf9   : > { %v375_v22 = vrot.slane %v374_v20, 2  ;;  %v386_v23 = vadd.f32 %v385_v21, %v384_v19 }
  0xfb   : > { %v376_v24 = vadd.f32 %v375_v22, %v374_v20  ;;  %v387_v25 = vrot.slane %v386_v23, 2  ;;  %v408_v20 = vld [vmem:[%s935_s16 + $0x78] sm:$0xff] }
  0xfd   : > { %v377_v26 = vrot.slane %v376_v24, 1  ;;  %v388_v27 = vadd.f32 %v387_v25, %v386_v23  ;;  %v406_v23 = vld [vmem:[%s935_s16 + $0x68] sm:$0xff] }
  0xff   : > { %v378_v29 = vadd.f32 %v377_v26, %v376_v24  ;;  %v389_v30 = vrot.slane %v388_v27, 1 }
 0x101   : > { %v379_v32 = vadd.f32 %v378_v29, %v371_v28  ;;  %v390_v33 = vadd.f32 %v389_v30, %v388_v27 }
 0x103   : > { %380 = vst [vmem:[%s920_s30] sm:$0x1] %v379_v32  ;;  %v391_v34 = vadd.f32 %v390_v33, %v381_v31 }
 0x105   : > { %392 = vst [vmem:[%s925_s8] sm:$0x1] %v391_v34 }
 0x157   : > { %v417_v35 = vpop.trf.xlu0 }
 0x158   : > { %746 = vmatprep.mubr.msk.bf16.mxu0 %vm425_vm2, %v417_v35 }
 0x15b   : > { %v418_v36 = vpop.trf.xlu0 }
 0x15c   : > { %747 = vmatmul.mubr.msk.bf16.vlgmr.msra.gmra.mxu0 %vm425_vm2, %v418_v36 }
 0x15f   : > { %v419_v37 = vpop.trf.xlu0 }
 0x160   : > { %750 = vmatprep.mubr.msk.bf16.mxu1 %vm425_vm2, %v419_v37 }
 0x163   : > { %v420_v38 = vpop.trf.xlu0 }
 0x164   : > { %751 = vmatmul.mubr.msk.bf16.vlgmr.msra.gmra.mxu1 %vm425_vm2, %v420_v38 }
 0x167   : > { %v421_v39 = vpop.trf.xlu0 }
 0x168   : > { %754 = vmatprep.mubr.msk.bf16.mxu1 %vm425_vm2, %v421_v39 }
 0x16b   : > { %v422_v40 = vpop.trf.xlu0 }
 0x16c   : > { %755 = vmatmul.mubr.msk.bf16.gmra.mxu1 %vm425_vm2, %v422_v40 }
 0x16f   : > { %v423_v41 = vpop.trf.xlu0 }
 0x170   : > { %758 = vmatprep.mubr.msk.bf16.mxu1 %vm425_vm2, %v423_v41 }
 0x173   : > { %v424_v42 = vpop.trf.xlu0 }
 0x174   : > { %759 = vmatmul.mubr.msk.bf16.gmra.mxu1 %vm425_vm2, %v424_v42 }
 0x21c   : > { %v748_v44 = vpop.f32.mrf.mxu0 }
 0x21d   : > { %v549_v46 = vadd.f32 %v748_v44, %v395_v43 }
 0x21e   : > { %v484_v47 = vpop.f32.mrf.mxu0 }
 0x21f   : > { %565 = vst [vmem:[%s935_s16 + $0x10] sm:$0xff] %v549_v46  ;;  %v547_v49 = vadd.f32 %v484_v47, %v393_v45 }
 0x220   : > { %v749_v50 = vpop.f32.mrf.mxu0 }
 0x221   : > { %563 = vst [vmem:[%s935_s16] sm:$0xff] %v547_v49  ;;  %v550_v52 = vadd.f32 %v749_v50, %v396_v48 }
 0x222   : > { %v487_v53 = vpop.f32.mrf.mxu0 }
 0x223   : > { %566 = vst [vmem:[%s935_s16 + $0x18] sm:$0xff] %v550_v52  ;;  %v548_v55 = vadd.f32 %v487_v53, %v394_v51 }
 0x224   : > { %v752_v56 = vpop.f32.mrf.mxu1 }
 0x225   : > { %564 = vst [vmem:[%s935_s16 + $0x8] sm:$0xff] %v548_v55  ;;  %v553_v58 = vadd.f32 %v752_v56, %v399_v54 }
 0x226   : > { %v500_v59 = vpop.f32.mrf.mxu1 }
 0x227   : > { %569 = vst [vmem:[%s935_s16 + $0x30] sm:$0xff] %v553_v58  ;;  %v551_v61 = vadd.f32 %v500_v59, %v397_v57 }
 0x228   : > { %v753_v62 = vpop.f32.mrf.mxu1 }
 0x229   : > { %567 = vst [vmem:[%s935_s16 + $0x20] sm:$0xff] %v551_v61  ;;  %v554_v0 = vadd.f32 %v753_v62, %v400_v60 }
 0x22a   : > { %v503_v1 = vpop.f32.mrf.mxu1 }
 0x22b   : > { %570 = vst [vmem:[%s935_s16 + $0x38] sm:$0xff] %v554_v0  ;;  %v552_v3 = vadd.f32 %v503_v1, %v398_v63 }
 0x22c   : > { %v756_v4 = vpop.f32.mrf.mxu1 }
 0x22d   : > { %568 = vst [vmem:[%s935_s16 + $0x28] sm:$0xff] %v552_v3  ;;  %v557_v6 = vadd.f32 %v756_v4, %v403_v2 }
 0x22e   : > { %v516_v7 = vpop.f32.mrf.mxu1 }
 0x22f   : > { %573 = vst [vmem:[%s935_s16 + $0x50] sm:$0xff] %v557_v6  ;;  %v555_v9 = vadd.f32 %v516_v7, %v401_v5 }
 0x230   : > { %v757_v10 = vpop.f32.mrf.mxu1 }
 0x231   : > { %571 = vst [vmem:[%s935_s16 + $0x40] sm:$0xff] %v555_v9  ;;  %v558_v12 = vadd.f32 %v757_v10, %v404_v8 }
 0x232   : > { %v519_v13 = vpop.f32.mrf.mxu1 }
 0x233   : > { %574 = vst [vmem:[%s935_s16 + $0x58] sm:$0xff] %v558_v12  ;;  %v556_v15 = vadd.f32 %v519_v13, %v402_v11 }
 0x234   : > { %v760_v16 = vpop.f32.mrf.mxu1 }
 0x235   : > { %572 = vst [vmem:[%s935_s16 + $0x48] sm:$0xff] %v556_v15  ;;  %v561_v18 = vadd.f32 %v760_v16, %v407_v14 }
 0x236   : > { %v532_v19 = vpop.f32.mrf.mxu1 }
 0x237   : > { %577 = vst [vmem:[%s935_s16 + $0x70] sm:$0xff] %v561_v18  ;;  %v559_v21 = vadd.f32 %v532_v19, %v405_v17 }
 0x238   : > { %v761_v22 = vpop.f32.mrf.mxu1 }
 0x239   : > { %575 = vst [vmem:[%s935_s16 + $0x60] sm:$0xff] %v559_v21  ;;  %v562_v24 = vadd.f32 %v761_v22, %v408_v20 }
 0x23a   : > { %v535_v25 = vpop.f32.mrf.mxu1 }
 0x23b   : > { %578 = vst [vmem:[%s935_s16 + $0x78] sm:$0xff] %v562_v24  ;;  %v560_v26 = vadd.f32 %v535_v25, %v406_v23 }
 0x23d   : > { %576 = vst [vmem:[%s935_s16 + $0x68] sm:$0xff] %v560_v26 }
 0x23e PF: > { %s16_s22 = sadd.s32 1, %s849_s22   ;;  %s1031_s18 = smov %s841_s20 }
 0x23f   : > { %p13_p8 = scmp.ge.s32.totalorder %s16_s22, 6   ;;  %s1032_s19 = smov %s845_s21 }
 0x240   : > { %s1033_s20 = smov %s1036_s23  ;;  %s1034_s21 = smov %s1040_s24 }
 0x241   :  { %15 = sbr.rel (!%p13_p8) target bundleno = 3 (0x3), region = 90 }

// kernel: output_layer_forward.3
= control target key start
LH: loop header
LB: loop body
LE: loop exit
PB: predicated region body
PF: predicated region fallthrough
CT: control target
= control target key end

     0   :  { %s827_s24 = smov 0   ;;  %s935_s0 = inlined_call_operand.vmem [shape: bf16[64,32], index: 0, kind: input, shape index: {}]   ;;  %s936_s1 = inlined_call_operand.vmem [shape: bf16[32,128], index: 1, kind: input, shape index: {}]   ;;  %s937_s2 = inlined_call_operand.vmem [shape: f32[1,128], index: 2, kind: input, shape index: {}]   ;;  %s938_s3 = inlined_call_operand.vmem [shape: bf16[128,128], index: 3, kind: input, shape index: {}]   ;;  %s939_s4 = inlined_call_operand.vmem [shape: f32[1,128], index: 4, kind: input, shape index: {}]   ;;  %s940_s5 = inlined_call_operand.vmem [shape: bf16[128,16], index: 5, kind: input, shape index: {}]   ;;  %s941_s6 = inlined_call_operand.vmem [shape: f32[1,16], index: 6, kind: input, shape index: {}]   ;;  %s942_s7 = inlined_call_operand.vmem [shape: f32[64,16], index: 7, kind: output, shape index: {}]  }
   0x1 LB: > { %s645_s25 = sadd.s32 4294967295, %s783_s24   ;;  %p649_p0 = scmp.ge.s32.totalorder %s783_s24, 1  ;;  %s783_s24 = sphi %s827_s24, %s17_s24  }
   0x2   : > { %p238_p1 = scmp.lt.s32.totalorder %s783_s24, 5 }
   0x4   : > { %p239_p2 = pnand %p649_p0, %p238_p1 }
   0x5   : > { %s650_s30 = sshll.u32 (!%p239_p2), %s645_s25, 1 }
   0x6   : > { %242 = sbr.rel (%p239_p2) target bundleno = 624 (0x270), region = 48  ;;  %p271_p3 = scmp.lt.s32.totalorder (!%p239_p2), %s650_s30, 7 }
   0xb   : > { %v758_v0 = vld [vmem:[%s936_s1 + $0x8] sm:$0xff]   ;;  %v785_v1 = vmov 0.0   ;;  %v759_v2 = vld [vmem:[%s936_s1] sm:$0xff]   ;;  %vm786_vm0 = vmmov 0   ;;  %v761_v3 = vld [vmem:[%s938_s3 + $0x38] sm:$0xff]   ;;  %s944_s30 = smov (!%p271_p3, %s650_s30), 7 }
   0xc   : > { %700 = vmatprep.subr.bf16.mxu0 %v785_v1  ;;  %708 = vmatprep.subr.bf16.mxu1 %v785_v1  ;;  %v762_v4 = vld [vmem:[%s938_s3 + $0x30] sm:$0xff]   ;;  %s651_s12 = sshll.u32 %s944_s30, 2  ;;  %vm313_vm1 = vcmask 261120   ;;  %v763_v5 = vld [vmem:[%s938_s3 + $0x28] sm:$0xff]   ;;  %v764_v7 = vld [vmem:[%s938_s3 + $0x20] sm:$0xff]   ;;  %s653_s28 = sshll.u32 %s944_s30, 3 }
   0xd   : > { %701 = vmatpush3.bf16.msra.mxu0 %v758_v0  ;;  %704 = vmatprep.mubr.msk.bf16.mxu0 %vm786_vm0, %v785_v1  ;;  %s274_s17 = scalar_lea.vmem %s935_s0, %s651_s12  ;;  %v765_v8 = vld [vmem:[%s938_s3 + $0x18] sm:$0xff]   ;;  %v766_v9 = vld [vmem:[%s938_s3 + $0x10] sm:$0xff]   ;;  %v767_v10 = vld [vmem:[%s938_s3 + $0x8] sm:$0xff]   ;;  %s280_s11 = scalar_lea.vmem %s942_s7, %s653_s28  ;;  %vm586_vm2 = vcmask 130048  }
   0xe   : > { %702 = vmatprep.subr.bf16.mxu0 %v785_v1  ;;  %724 = vmatprep.mubr.msk.bf16.mxu1 %vm786_vm0, %v785_v1  ;;  %v760_v6 = vld [vmem:[%s274_s17] sm:$0xff]   ;;  %v769_v12 = vld [vmem:[%s940_s5 + $0x38] sm:$0xff]   ;;  %v770_v13 = vld [vmem:[%s940_s5 + $0x30] sm:$0xff]  }
   0xf   : > { %709 = vmatpush3.bf16.msra.mxu1 %v761_v3  ;;  %v768_v11 = vld [vmem:[%s938_s3] sm:$0xff]   ;;  %v771_v14 = vld [vmem:[%s940_s5 + $0x28] sm:$0xff]   ;;  %v773_v16 = vld [vmem:[%s940_s5 + $0x18] sm:$0xff]  }
  0x10   : > { %710 = vmatprep.subr.bf16.mxu1 %v785_v1  ;;  %v772_v15 = vld [vmem:[%s940_s5 + $0x20] sm:$0xff]   ;;  %v774_v17 = vld [vmem:[%s940_s5 + $0x10] sm:$0xff]   ;;  %v775_v28 = vld [vmem:[%s940_s5 + $0x8] sm:$0xff]  }
  0x11   : > { %703 = vmatpush3.bf16.msra.mxu0 %v759_v2  ;;  %v654_v18 = vld [vmem:[%s937_s2] ss:$0 sm:$0xff] }
  0x12   : > { %728 = vmatprep.subr.bf16.mxu0 %v785_v1  ;;  %v776_v29 = vld [vmem:[%s940_s5] sm:$0xff]  }
  0x13   : > { %711 = vmatpush3.bf16.msra.mxu1 %v762_v4  ;;  %v659_v31 = vld [vmem:[%s939_s4] ss:$0 sm:$0xff] }
  0x14   : > { %712 = vmatprep.subr.bf16.mxu1 %v785_v1  ;;  %705 = vmatmul.mubr.msk.bf16.vlgmr.msra.gmra.mxu0 %vm313_vm1, %v760_v6  ;;  %v668_v38 = vld [vmem:[%s941_s6] ss:$0 sm:$0xff] }
  0x15   : > { %744 = vmatprep.mubr.msk.bf16.mxu0 %vm786_vm0, %v785_v1  ;;  %729 = vmatpush3.bf16.msra.mxu0 %v769_v12 }
  0x16   : > { %730 = vmatprep.subr.bf16.mxu0 %v785_v1 }
  0x17   : > { %713 = vmatpush3.bf16.msra.mxu1 %v763_v5 }
  0x18   : > { %714 = vmatprep.subr.bf16.mxu1 %v785_v1 }
  0x19   : > { %731 = vmatpush3.bf16.msra.mxu0 %v770_v13 }
  0x1a   : > { %732 = vmatprep.subr.bf16.mxu0 %v785_v1 }
  0x1b   : > { %715 = vmatpush3.bf16.msra.mxu1 %v764_v7 }
  0x1c   : > { %716 = vmatprep.subr.bf16.mxu1 %v785_v1 }
  0x1d   : > { %733 = vmatpush3.bf16.msra.mxu0 %v771_v14 }
  0x1e   : > { %734 = vmatprep.subr.bf16.mxu0 %v785_v1 }
  0x1f   : > { %717 = vmatpush3.bf16.msra.mxu1 %v765_v8 }
  0x20   : > { %718 = vmatprep.subr.bf16.mxu1 %v785_v1 }
  0x21   : > { %735 = vmatpush3.bf16.msra.mxu0 %v772_v15 }
  0x22   : > { %736 = vmatprep.subr.bf16.mxu0 %v785_v1 }
  0x23   : > { %719 = vmatpush3.bf16.msra.mxu1 %v766_v9 }
  0x24   : > { %720 = vmatprep.subr.bf16.mxu1 %v785_v1 }
  0x25   : > { %737 = vmatpush3.bf16.msra.mxu0 %v773_v16 }
  0x26   : > { %738 = vmatprep.subr.bf16.mxu0 %v785_v1 }
  0x27   : > { %721 = vmatpush3.bf16.msra.mxu1 %v767_v10 }
  0x28   : > { %722 = vmatprep.subr.bf16.mxu1 %v785_v1 }
  0x29   : > { %739 = vmatpush3.bf16.msra.mxu0 %v774_v17 }
  0x2a   : > { %740 = vmatprep.subr.bf16.mxu0 %v785_v1 }
  0x2b   : > { %723 = vmatpush3.bf16.msra.mxu1 %v768_v11 }
  0x2d   : > { %741 = vmatpush3.bf16.msra.mxu0 %v775_v28 }
  0x2e   : > { %742 = vmatprep.subr.bf16.mxu0 %v785_v1 }
  0x31   : > { %743 = vmatpush3.bf16.msra.mxu0 %v776_v29 }
  0xd4   : > { %v351_v19 = vpop.f32.mrf.mxu0 }
  0xd5   : > { %v352_v21 = vadd.f32 %v654_v18, %v351_v19 }
  0xd6   : > { %v706_v20 = vpop.f32.mrf.mxu0 }
  0xd7   : > { %v358_v25 = vmax.f32 %v352_v21, 0.0 }
  0xd8   : > { %v354_v22 = vpop.f32.mrf.mxu0 }
  0xd9   : > { %v355_v23 = vadd.f32 %v654_v18, %v354_v22 }
  0xda   : > { %v707_v24 = vpop.f32.mrf.mxu0 }
  0xdb   : > { %v359_v26 = vmax.f32 %v355_v23, 0.0 }
  0xdd   : > { %v360_v27 = vpack.c.bf16 %v359_v26, %v358_v25 }
  0xdf   : > { %725 = vmatmul.mubr.bf16.vlgmr.msra.gmra.mxu1 %v360_v27 }
 0x19f   : > { %v466_v30 = vpop.f32.mrf.mxu1 }
 0x1a0   : > { %v467_v34 = vadd.f32 %v659_v31, %v466_v30 }
 0x1a1   : > { %v726_v32 = vpop.f32.mrf.mxu1 }
 0x1a3   : > { %v469_v33 = vpop.f32.mrf.mxu1 }
 0x1a4   : > { %v470_v35 = vadd.f32 %v659_v31, %v469_v33 }
 0x1a5   : > { %v727_v36 = vpop.f32.mrf.mxu1 }
 0x1a6   : > { %v473_v37 = vpack.c.bf16 %v470_v35, %v467_v34 }
 0x1a8   : > { %745 = vmatmul.mubr.bf16.vlgmr.msra.gmra.mxu0 %v473_v37 }
 0x268   : > { %v579_v39 = vpop.f32.mrf.mxu0 }
 0x269   : > { %v580_v40 = vadd.f32 %v668_v38, %v579_v39 }
 0x26a   : > { %v746_v41 = vpop.f32.mrf.mxu0 }
 0x26b   : > { %587 = vst.msk [vmem:[%s280_s11] sm:$0xff] %vm586_vm2, %v580_v40 }
 0x26c   : > { %v582_v42 = vpop.f32.mrf.mxu0 }
 0x26d   : > { %v583_v43 = vadd.f32 %v668_v38, %v582_v42 }
 0x26e   : > { %v747_v44 = vpop.f32.mrf.mxu0 }
 0x26f   : > { %588 = vst.msk [vmem:[%s280_s11 + $0x8] sm:$0xff] %vm586_vm2, %v583_v43 }
 0x270 PF: > { %s17_s24 = sadd.s32 1, %s783_s24  }
 0x271   : > { %p14_p4 = scmp.ge.s32.totalorder %s17_s24, 6  }
 0x273   :  { %16 = sbr.rel (!%p14_p4) target bundleno = 1 (0x1), region = 78 }

</bundles_post_ra>
